<compile_context>
chip_gen: v5e
topology: v5e:2x2
jax: 0.10.0
libtpu: 0.0.40
codegen_flags: <defaults>
</compile_context>

<pallas_src>
import functools

import jax
import jax.numpy as jnp
from jax import lax
from jax.experimental import pallas as pl
from jax.experimental.pallas import tpu as pltpu

_GOLDEN_I32 = 0x9E3779B9 - (1 << 32)   # 2^32/golden-ratio, wrapped to int32


def _round_up(x, m):
    return (x + m - 1) // m * m


def _pick_tile_b(batch):
    """Batch-lane tile: per-chip cap; >= 2 tiles when possible (both TCs on v7x)."""
    try:
        kind = jax.devices()[0].device_kind.lower()
    except Exception:
        kind = ""
    old_gen = any(t in kind for t in ("v2", "v3", "v4", "v5 lite", "v5lite", "v5e"))
    # per-step input DMA = 2 * F(32) * tile_b * 4B  ->  4 MiB (old) / 8 MiB (new),
    # double-buffered ~8 / ~16 MiB: inside every chip's scoped-VMEM budget.
    cap = 16384 if old_gen else 32768
    half = _round_up((batch + 1) // 2, 128)   # split small batches across 2 tiles
    return max(128, min(cap, half))


def _mix32(x):
    """Mul-free xorshift-style mixer on uint32 (VPU shifts/xors only)."""
    x = x ^ (x << 13)
    x = x ^ (x >> 17)
    x = x ^ (x << 5)
    x = x ^ (x >> 16)
    return x


def _gmfd_kernel(seed_ref, bias_ref, u_ref, i_ref, w_ref, o_ref, *, prob, n_factors):
    """seed:(1,)i32 SMEM  bias:(1,)f32 SMEM  u,i:(TILE_B,F) VMEM  w:(F,1)  o:(1,TILE_B)."""
    if prob >= 1.0:                      # torch Dropout(p=1.0): everything dropped
        o_ref[...] = jax.nn.sigmoid(jnp.full(o_ref.shape, bias_ref[0], jnp.float32))
        return

    # u*i in the gathered (TILE_B, F) layout (one VPU op), then a single XLU
    # transpose to the lane-dense (F, TILE_B) layout for all remaining work.
    prod = u_ref[...].astype(jnp.float32) * i_ref[...].astype(jnp.float32)
    prod = jnp.transpose(prod, (1, 0))                 # (F, TILE_B), batch on lanes

    w = w_ref[...].astype(jnp.float32)                 # (F, 1), lane-broadcast

    if 0.0 < prob < 1.0:
        # One hash per (b, f) element; the low / high 16-bit fields give the two
        # independent Bernoulli(1-p) keep tests (u-dropout and i-dropout).
        tile_b = prod.shape[1]
        base = (seed_ref[0] * jnp.int32(_GOLDEN_I32)
                + pl.program_id(0) * jnp.int32(tile_b * n_factors))  # scalar, wraps
        f_idx = lax.broadcasted_iota(jnp.int32, prod.shape, 0)       # sublane idx
        b_idx = lax.broadcasted_iota(jnp.int32, prod.shape, 1)       # lane idx
        ctr = base + b_idx * jnp.int32(n_factors) + f_idx            # global elem id
        bits = _mix32(pltpu.bitcast(ctr, jnp.uint32))
        # keep-probability resolution is 1/65536 per field (negligible for dropout)
        thresh = jnp.uint32(min(int(round(prob * 65536.0)), 65535))
        keep = ((bits & jnp.uint32(0xFFFF)) >= thresh) & ((bits >> 16) >= thresh)
        prod = jnp.where(keep, prod, 0.0)
        w = w * jnp.float32(1.0 / ((1.0 - prob) ** 2))   # fold both dropout scales

    x = jnp.sum(prod * w, axis=0, keepdims=True)         # sublane reduce -> (1, TILE_B)
    o_ref[...] = jax.nn.sigmoid(x + bias_ref[0])          # EUP, lane-dense store


def gmfd_forward(params, user, item, *, prob=0.5, seed=0):
    """Pallas GMFD forward: sigmoid(sum_f(drop(u)*drop(i)*w_f) + b), returns (B,)."""
    # TODO(synk): fuse the embedding row gather into the kernel (scalar-prefetched
    # indices / manual DMA) to avoid materializing the gathered (B, F) rows in HBM.
    n_factors = params["user_emb"].shape[1]
    batch = int(user.shape[0])

    tile_b = _pick_tile_b(batch)
    b_pad = _round_up(batch, tile_b)
    if b_pad != batch:
        # Pad the cheap int32 index vectors (valid index 0), NOT the gathered
        # matrices; padded lanes are sliced off at the end.
        user = jnp.pad(user, (0, b_pad - batch))
        item = jnp.pad(item, (0, b_pad - batch))
    num_tiles = b_pad // tile_b

    # Row gather stays in XLA glue; its (b_pad, F) result feeds the kernel as-is
    # (no .T, no pad pass).  bf16 tables are upcast in-register inside the kernel.
    u = jnp.take(params["user_emb"], user, axis=0)        # (b_pad, F)
    it = jnp.take(params["item_emb"], item, axis=0)       # (b_pad, F)
    w = params["h_w"]                                     # (F, 1)
    b = params["h_b"].reshape(1).astype(jnp.float32)      # (1,)
    seed_arr = jnp.asarray([seed], dtype=jnp.int32)

    esize = jnp.dtype(params["user_emb"].dtype).itemsize
    cost = pl.CostEstimate(
        flops=3 * n_factors * b_pad,
        transcendentals=b_pad,
        bytes_accessed=2 * n_factors * b_pad * esize + b_pad * 4 + n_factors * 4,
    )

    out = pl.pallas_call(
        functools.partial(_gmfd_kernel, prob=float(prob), n_factors=n_factors),
        out_shape=jax.ShapeDtypeStruct((1, b_pad), jnp.float32),
        grid=(num_tiles,),
        in_specs=[
            pl.BlockSpec(memory_space=pltpu.MemorySpace.SMEM),        # seed
            pl.BlockSpec(memory_space=pltpu.MemorySpace.SMEM),        # bias
            pl.BlockSpec((tile_b, n_factors), lambda i: (i, 0)),      # gathered u rows
            pl.BlockSpec((tile_b, n_factors), lambda i: (i, 0)),      # gathered i rows
            pl.BlockSpec((n_factors, 1), lambda i: (0, 0)),           # w (resident)
        ],
        out_specs=pl.BlockSpec((1, tile_b), lambda i: (0, i)),
        compiler_params=pltpu.CompilerParams(
            dimension_semantics=("parallel",),
            vmem_limit_bytes=32 * 1024 * 1024),
        cost_estimate=cost,
    )(seed_arr, b, u, it, w)
    # Matches torch .squeeze() for B > 1 (for B == 1 torch returns a 0-d scalar).
    return out[0, :batch]


def _init_params(key, n_users, n_items, n_factors):
    k1, k2, k3, k4 = jax.random.split(key, 4)
    bound = 1.0 / (n_factors ** 0.5)
    return {
        # nn.Embedding default init: N(0, 1)
        "user_emb": jax.random.normal(k1, (n_users, n_factors), jnp.float32),
        "item_emb": jax.random.normal(k2, (n_items, n_factors), jnp.float32),
        # nn.Linear default init: U(-1/sqrt(F), 1/sqrt(F))
        "h_w": jax.random.uniform(k3, (n_factors, 1), jnp.float32, -bound, bound),
        "h_b": jax.random.uniform(k4, (1,), jnp.float32, -bound, bound),
    }


if __name__ == "__main__":
    n_users, n_items, n_factors, batch = 16, 32, 32, 8

    key = jax.random.PRNGKey(0)
    kp, ku, ki = jax.random.split(key, 3)
    params = _init_params(kp, n_users, n_items, n_factors)
    user = jax.random.randint(ku, (batch,), 0, n_users, dtype=jnp.int32)
    item = jax.random.randint(ki, (batch,), 0, n_items, dtype=jnp.int32)

    # Eval-mode (dropout off) correctness check against a pure-JAX reference.
    out_eval = gmfd_forward(params, user, item, prob=0.0)
    jax.block_until_ready(out_eval)
    u_ref = jnp.take(params["user_emb"], user, axis=0)
    i_ref = jnp.take(params["item_emb"], item, axis=0)
    ref = jax.nn.sigmoid((u_ref * i_ref) @ params["h_w"] + params["h_b"])[:, 0]
    assert out_eval.shape == (batch,)
    assert jnp.allclose(out_eval, ref, atol=1e-5, rtol=1e-5), "eval-mode mismatch"

    # Training-mode forward with dropout p=0.5 (deterministic in-kernel hash mask).
    out = gmfd_forward(params, user, item, prob=0.5, seed=1234)
    jax.block_until_ready(out)
    assert out.shape == (batch,)
    assert bool(jnp.all((out >= 0.0) & (out <= 1.0)))
    # Determinism for a fixed seed.
    out2 = gmfd_forward(params, user, item, prob=0.5, seed=1234)
    jax.block_until_ready(out2)
    assert jnp.allclose(out, out2)

    print("KERNEL_OK")
</pallas_src>

<mosaic_0001>
module attributes {stable_mosaic.version = 11 : i64} {
  func.func @_gmfd_kernel(%arg0: i32, %arg1: memref<1xi32, #tpu.memory_space<smem>>, %arg2: memref<1xf32, #tpu.memory_space<smem>>, %arg3: memref<128x32xf32, #tpu.memory_space<vmem>>, %arg4: memref<128x32xf32, #tpu.memory_space<vmem>>, %arg5: memref<32x1xf32, #tpu.memory_space<vmem>>, %arg6: memref<1x128xf32, #tpu.memory_space<vmem>>) attributes {dimension_semantics = [#tpu.dimension_semantics<parallel>], iteration_bounds = array<i64: 1>, scalar_prefetch = 0 : i64, scratch_operands = 0 : i64, tpu.core_type = #tpu.core_type<tc>, window_params = [{transform_indices = @transform_0, window_bounds = array<i64: 1>}, {transform_indices = @transform_1, window_bounds = array<i64: 1>}, {transform_indices = @transform_2, window_bounds = array<i64: 128, 32>}, {transform_indices = @transform_3, window_bounds = array<i64: 128, 32>}, {pipeline_mode = #tpu.pipeline_mode<synchronous>, transform_indices = @transform_4, window_bounds = array<i64: 32, 1>}, {transform_indices = @transform_5, window_bounds = array<i64: 1, 128>}]} {
    %c0 = arith.constant 0 : index
    %c0_0 = arith.constant 0 : index
    %0 = vector.load %arg3[%c0, %c0_0] : memref<128x32xf32, #tpu.memory_space<vmem>>, vector<128x32xf32>
    %c0_1 = arith.constant 0 : index
    %c0_2 = arith.constant 0 : index
    %1 = vector.load %arg4[%c0_1, %c0_2] : memref<128x32xf32, #tpu.memory_space<vmem>>, vector<128x32xf32>
    %2 = arith.mulf %0, %1 : vector<128x32xf32>
    %3 = tpu.transpose %2, [1, 0] : vector<128x32xf32> -> vector<32x128xf32>
    %c0_3 = arith.constant 0 : index
    %c0_4 = arith.constant 0 : index
    %4 = vector.load %arg5[%c0_3, %c0_4] : memref<32x1xf32, #tpu.memory_space<vmem>>, vector<32x1xf32>
    %5 = vector.broadcast %4 : vector<32x1xf32> to vector<32x128xf32>
    %6 = arith.mulf %3, %5 : vector<32x128xf32>
    %cst = arith.constant dense<0.000000e+00> : vector<128xf32>
    %7 = vector.multi_reduction <add>, %6, %cst [0] : vector<32x128xf32> to vector<128xf32>
    %8 = vector.shape_cast %7 : vector<128xf32> to vector<1x128xf32>
    %c0_5 = arith.constant 0 : index
    %9 = memref.load %arg2[%c0_5] : memref<1xf32, #tpu.memory_space<smem>>
    %10 = vector.broadcast %9 : f32 to vector<1x128xf32>
    %11 = arith.addf %8, %10 : vector<1x128xf32>
    %12 = arith.negf %11 : vector<1x128xf32>
    %13 = math.exp %12 : vector<1x128xf32>
    %cst_6 = arith.constant 1.000000e+00 : f32
    %14 = vector.broadcast %cst_6 : f32 to vector<1x128xf32>
    %15 = arith.addf %14, %13 : vector<1x128xf32>
    %16 = arith.divf %14, %15 : vector<1x128xf32>
    %c0_7 = arith.constant 0 : index
    %c0_8 = arith.constant 0 : index
    %17 = vector.load %arg6[%c0_7, %c0_8] : memref<1x128xf32, #tpu.memory_space<vmem>>, vector<1x128xf32>
    tpu.vector_store %arg6[%c0_7, %c0_8], %16 {strides = array<i32>} : memref<1x128xf32, #tpu.memory_space<vmem>>, vector<1x128xf32>,
    return
  }
  func.func @transform_0(%arg0: i32) -> i32 {
    %c0_i32 = arith.constant 0 : i32
    %c0_i32_0 = arith.constant 0 : i32
    return %c0_i32 : i32
  }
  func.func @transform_1(%arg0: i32) -> i32 {
    %c0_i32 = arith.constant 0 : i32
    %c0_i32_0 = arith.constant 0 : i32
    return %c0_i32 : i32
  }
  func.func @transform_2(%arg0: i32) -> (i32, i32) {
    %c0_i32 = arith.constant 0 : i32
    %c0_i32_0 = arith.constant 0 : i32
    return %arg0, %c0_i32 : i32, i32
  }
  func.func @transform_3(%arg0: i32) -> (i32, i32) {
    %c0_i32 = arith.constant 0 : i32
    %c0_i32_0 = arith.constant 0 : i32
    return %arg0, %c0_i32 : i32, i32
  }
  func.func @transform_4(%arg0: i32) -> (i32, i32) {
    %c0_i32 = arith.constant 0 : i32
    %c0_i32_0 = arith.constant 0 : i32
    %c0_i32_1 = arith.constant 0 : i32
    return %c0_i32, %c0_i32_0 : i32, i32
  }
  func.func @transform_5(%arg0: i32) -> (i32, i32) {
    %c0_i32 = arith.constant 0 : i32
    %c0_i32_0 = arith.constant 0 : i32
    return %c0_i32, %arg0 : i32, i32
  }
}

</mosaic_0001>

<bundles_post_ra>
// kernel: tpu_custom_call.1
= control target key start
LH: loop header
LB: loop body
LE: loop exit
PB: predicated region body
PF: predicated region fallthrough
CT: control target
= control target key end

     0   :  { %s364_s0 = inlined_call_operand.<no memory space> [shape: s32[1], index: 0, kind: input, shape index: {}]   ;;  %s365_s1 = inlined_call_operand.<no memory space> [shape: f32[1], index: 1, kind: input, shape index: {}]   ;;  %s366_s2 = inlined_call_operand.vmem [shape: f32[128,32], index: 2, kind: input, shape index: {}]   ;;  %s367_s3 = inlined_call_operand.vmem [shape: f32[128,32], index: 3, kind: input, shape index: {}]   ;;  %s368_s4 = inlined_call_operand.vmem [shape: f32[32,1], index: 4, kind: input, shape index: {}]   ;;  %s369_s5 = inlined_call_operand.hbm [shape: f32[1,128], index: 5, kind: output, shape index: {}]  }
   0x1   :  { %v23_v0 = vld [vmem:[%s366_s2] sm:$0xff]  ;;  %v24_v3 = vld [vmem:[%s366_s2 + $0x8] sm:$0xff] }
   0x2   :  { %v39_v1 = vld [vmem:[%s367_s3] sm:$0xff]  ;;  %v40_v4 = vld [vmem:[%s367_s3 + $0x8] sm:$0xff] }
   0x3   :  { %v55_v2 = vmul.f32 %v39_v1, %v23_v0 }
   0x5   :  { %71 = vxpose.xlu0.b32.start [1/16] (narrow) %v55_v2, 32 }
   0x6   :  { %12 = vsyncpa [#allocation5], 0  ;;  %v56_v5 = vmul.f32 %v40_v4, %v24_v3  ;;  %v25_v6 = vld [vmem:[%s366_s2 + $0x10] sm:$0xff]  ;;  %v103_v9 = vld [vmem:[%s368_s4] sm:$0xff]  ;;  %v215_v12 = vmov 0   ;;  %s216_s11 = smov [#allocation4]  }
   0x7   :  { %v41_v7 = vld [vmem:[%s367_s3 + $0x10] sm:$0xff]  ;;  %v26_v10 = vld [vmem:[%s366_s2 + $0x18] sm:$0xff]  ;;  %182 = vset.pattern.permute.xlu1 %v215_v12  ;;  %183 = vset.pattern.permute.xlu2 %v215_v12  ;;  %v104_v14 = vld [vmem:[%s368_s4 + $0x8] sm:$0xff]  ;;  %s168_s12 = sshll.u32 %s216_s11, 4  ;;  %s169_s12 = int_to_ptr.vmem [resolvable:$true] %s168_s12 }
   0x8   :  { %v57_v8 = vmul.f32 %v41_v7, %v25_v6  ;;  %v42_v11 = vld [vmem:[%s367_s3 + $0x18] sm:$0xff]  ;;  %109 = vperm.xlu1 %182, %v103_v9   ;;  %v27_v15 = vld [vmem:[%s366_s2 + $0x20] sm:$0xff]  ;;  %v28_v18 = vld [vmem:[%s366_s2 + $0x28] sm:$0xff]  ;;  %v141_v9 = vstv %s365_s1 }
   0x9   :  { %v58_v13 = vmul.f32 %v42_v11, %v26_v10  ;;  %v43_v16 = vld [vmem:[%s367_s3 + $0x20] sm:$0xff]  ;;  %v44_v19 = vld [vmem:[%s367_s3 + $0x28] sm:$0xff]  ;;  %v29_v21 = vld [vmem:[%s366_s2 + $0x30] sm:$0xff] }
   0xa   :  { %v59_v17 = vmul.f32 %v43_v16, %v27_v15  ;;  %v60_v20 = vmul.f32 %v44_v19, %v28_v18  ;;  %v45_v22 = vld [vmem:[%s367_s3 + $0x30] sm:$0xff]  ;;  %v30_v25 = vld [vmem:[%s366_s2 + $0x38] sm:$0xff]  ;;  %v31_v29 = vld [vmem:[%s366_s2 + $0x40] sm:$0xff] }
   0xb   :  { %v61_v23 = vmul.f32 %v45_v22, %v29_v21  ;;  %v105_v24 = vld [vmem:[%s368_s4 + $0x10] sm:$0xff]  ;;  %v46_v26 = vld [vmem:[%s367_s3 + $0x38] sm:$0xff]  ;;  %v47_v30 = vld [vmem:[%s367_s3 + $0x40] sm:$0xff] }
   0xc   :  { %119 = vperm.xlu2 %183, %v105_v24   ;;  %v62_v27 = vmul.f32 %v46_v26, %v30_v25  ;;  %v106_v28 = vld [vmem:[%s368_s4 + $0x18] sm:$0xff]  ;;  %v63_v31 = vmul.f32 %v47_v30, %v31_v29  ;;  %v32_v32 = vld [vmem:[%s366_s2 + $0x48] sm:$0xff]  ;;  %v33_v35 = vld [vmem:[%s366_s2 + $0x50] sm:$0xff]  ;;  %s170_s4 = sshll.u32 %s369_s5, 4  ;;  %s171_s4 = int_to_ptr.hbm [resolvable:$true] %s170_s4 }
   0xd   :  { %72 = vxpose.xlu0.b32.cont [2/16] (narrow) %v56_v5, 32  ;;  %v48_v33 = vld [vmem:[%s367_s3 + $0x48] sm:$0xff]  ;;  %v49_v36 = vld [vmem:[%s367_s3 + $0x50] sm:$0xff]  ;;  %v34_v38 = vld [vmem:[%s366_s2 + $0x58] sm:$0xff] }
   0xe   :  { %v64_v34 = vmul.f32 %v48_v33, %v32_v32  ;;  %v65_v37 = vmul.f32 %v49_v36, %v33_v35  ;;  %v50_v39 = vld [vmem:[%s367_s3 + $0x58] sm:$0xff]  ;;  %v35_v41 = vld [vmem:[%s366_s2 + $0x60] sm:$0xff]  ;;  %v36_v44 = vld [vmem:[%s366_s2 + $0x68] sm:$0xff] }
   0xf   :  { %v66_v40 = vmul.f32 %v50_v39, %v34_v38  ;;  %v51_v42 = vld [vmem:[%s367_s3 + $0x60] sm:$0xff]  ;;  %v52_v45 = vld [vmem:[%s367_s3 + $0x68] sm:$0xff]  ;;  %v37_v47 = vld [vmem:[%s366_s2 + $0x70] sm:$0xff] }
  0x10   :  { %114 = vperm.xlu1 %182, %v104_v14   ;;  %v67_v43 = vmul.f32 %v51_v42, %v35_v41  ;;  %v68_v46 = vmul.f32 %v52_v45, %v36_v44  ;;  %v53_v48 = vld [vmem:[%s367_s3 + $0x70] sm:$0xff]  ;;  %v38_v50 = vld [vmem:[%s366_s2 + $0x78] sm:$0xff] }
  0x11   :  { %v69_v49 = vmul.f32 %v53_v48, %v37_v47  ;;  %v54_v51 = vld [vmem:[%s367_s3 + $0x78] sm:$0xff] }
  0x12   :  { %v70_v52 = vmul.f32 %v54_v51, %v38_v50 }
  0x14   :  { %124 = vperm.xlu2 %183, %v106_v28  }
  0x15   :  { %73 = vxpose.xlu0.b32.cont [3/16] (narrow) %v57_v8, 32 }
  0x1d   :  { %74 = vxpose.xlu0.b32.cont [4/16] (narrow) %v58_v13, 32 }
  0x25   :  { %75 = vxpose.xlu0.b32.cont [5/16] (narrow) %v59_v17, 32 }
  0x2d   :  { %76 = vxpose.xlu0.b32.cont [6/16] (narrow) %v60_v20, 32 }
  0x35   :  { %77 = vxpose.xlu0.b32.cont [7/16] (narrow) %v61_v23, 32 }
  0x3d   :  { %78 = vxpose.xlu0.b32.cont [8/16] (narrow) %v62_v27, 32 }
  0x45   :  { %79 = vxpose.xlu0.b32.cont [9/16] (narrow) %v63_v31, 32 }
  0x4d   :  { %80 = vxpose.xlu0.b32.cont [10/16] (narrow) %v64_v34, 32 }
  0x55   :  { %81 = vxpose.xlu0.b32.cont [11/16] (narrow) %v65_v37, 32 }
  0x5d   :  { %82 = vxpose.xlu0.b32.cont [12/16] (narrow) %v66_v40, 32 }
  0x65   :  { %83 = vxpose.xlu0.b32.cont [13/16] (narrow) %v67_v43, 32 }
  0x66   :  { %v120_v56 = vpop.permute.xlu2 %119 }
  0x6d   :  { %84 = vxpose.xlu0.b32.cont [14/16] (narrow) %v68_v46, 32 }
  0x6e   :  { %v125_v63 = vpop.permute.xlu2 %124 }
  0x75   :  { %85 = vxpose.xlu0.b32.cont [15/16] (narrow) %v69_v49, 32 }
  0x7a   :  { %v110_v54 = vpop.permute.xlu1 %109 }
  0x7d   :  { %86 = vxpose.xlu0.b32.end [16/16] (narrow) %v70_v52, 32 }
  0x82   :  { %v115_v57 = vpop.permute.xlu1 %114 }
  0xa9   :  { %v87_v53 = vpop.trf.xlu0 }
  0xaa   :  { %v127_v60 = vmul.f32 %v110_v54, %v87_v53 }
  0xb1   :  { %v88_v55 = vpop.trf.xlu0 }
  0xb2   :  { %v128_v59 = vmul.f32 %v115_v57, %v88_v55 }
  0xb4   :  { %v131_v62 = vadd.f32 %v128_v59, %v127_v60 }
  0xb9   :  { %v89_v58 = vpop.trf.xlu0 }
  0xba   :  { %v129_v61 = vmul.f32 %v120_v56, %v89_v58 }
  0xbc   :  { %v132_v1 = vadd.f32 %v131_v62, %v129_v61 }
  0xc1   :  { %v90_v0 = vpop.trf.xlu0 }
  0xc2   :  { %v130_v2 = vmul.f32 %v125_v63, %v90_v0 }
  0xc4   :  { %v133_v3 = vadd.f32 %v132_v1, %v130_v2 }
  0xc6   :  { %v134_v4 = vrot.slane %v133_v3, 4 }
  0xc8   :  { %v135_v5 = vadd.f32 %v134_v4, %v133_v3 }
  0xca   :  { %v136_v6 = vrot.slane %v135_v5, 2 }
  0xcc   :  { %v137_v7 = vadd.f32 %v136_v6, %v135_v5 }
  0xce   :  { %v138_v8 = vrot.slane %v137_v7, 1 }
  0xd0   :  { %v139_v10 = vadd.f32 %v138_v8, %v137_v7 }
  0xd2   :  { %v142_v11 = vadd.f32 %v141_v9, %v139_v10 }
  0xd4   :  { %v179_v13 = vmul.f32 -1.442695, %v142_v11 }
  0xd6   :  { %185 = vpow2.f32 %v179_v13 }
  0xdc   :  { %v186_v14 = vpop.eup %185 }
  0xdd   :  { %v146_v15 = vadd.f32 1.0, %v186_v14 }
  0xdf   :  { %187 = vrcp.f32 %v146_v15  ;;  %v158_v19 = vand.u32 2147483648, %v146_v15  ;;  %v156_v21 = vand.u32 2147483647, %v146_v15  ;;  %vm152_vm1 = vweird.f32 %v146_v15 }
  0xe1   :  { %v159_v23 = vor.u32 1.1754944e-38, %v158_v19  ;;  %vm157_vm3 = vcmp.eq.f32.partialorder %v156_v21, 8.507059e+37 }
  0xe4   :  { %184 = vset.pattern.permute.xlu0 %v215_v12 }
  0xe5   :  { %v188_v16 = vpop.eup %187 }
  0xe6   :  { %v148_v17 = vmul.f32 %v188_v16, %v146_v15  ;;  %vm153_vm0 = vweird.f32 %v188_v16 }
  0xe7   :  { %vm154_vm2 = vmor %vm152_vm1, %vm153_vm0 }
  0xe8   :  { %v149_v18 = vsub.f32 1.0, %v148_v17 }
  0xea   :  { %v150_v20 = vmul.f32 %v188_v16, %v149_v18 }
  0xec   :  { %v151_v22 = vadd.f32 %v188_v16, %v150_v20 }
  0xee   :  { %v155_v24 = vsel %vm154_vm2, %v188_v16, %v151_v22 }
  0xef   :  { %v160_v12 = vsel %vm157_vm3, %v159_v23, %v155_v24 }
  0xf0   :  { %162 = vst [vmem:[#allocation4] sm:$0x1] %v160_v12 }
  0xf1   :  { %173 = dma.vmem_to_hbm [thread:$0]  %s169_s12, 16, %s171_s4, [#allocation5]  }
  0xf2   :  { %213 = dma.done.wait [#allocation5], 16  }
  0xf3   :  { %214 = vsyncadd [#allocation5], 4294967280 }
  0xf4   :  { %178 = vsyncpa [#allocation5], 1 }

</bundles_post_ra>
